<compile_context>
chip_gen: v7x
topology: tpu7x:2x2x1
jax: 0.10.0
libtpu: 0.0.40
codegen_flags: <defaults>
</compile_context>

<pallas_src>
import functools

import jax
import jax.numpy as jnp
from jax import lax
from jax.experimental import pallas as pl
from jax.experimental.pallas import tpu as pltpu


def _round_up(x, m):
    return ((x + m - 1) // m) * m


def attention_kernel(xq_ref, xkv_ref, wq_ref, bq_ref, wkv_ref, bkv_ref,
                     wo_ref, bo_ref, o_ref,
                     q_sc, m_sc, l_sc, acc_sc,
                     *, scale, seq_len, tk, d_pad):
    ki = pl.program_id(2)

    @pl.when(ki == 0)
    def _init():
        # Project the Q tile once per (batch, q-tile); bf16 operands, f32 acc.
        q = jnp.dot(xq_ref[0], wq_ref[...],
                    preferred_element_type=jnp.float32) + bq_ref[...]
        q_sc[...] = (q * scale).astype(q_sc.dtype)
        m_sc[...] = jnp.full(m_sc.shape, -jnp.inf, dtype=m_sc.dtype)
        l_sc[...] = jnp.zeros_like(l_sc)
        acc_sc[...] = jnp.zeros_like(acc_sc)

    # Fused K|V projection for this KV tile: one (tk, D) @ (D, 2D) matmul.
    kv = jnp.dot(xkv_ref[0], wkv_ref[...],
                 preferred_element_type=jnp.float32) + bkv_ref[...]
    k = kv[:, :d_pad].astype(jnp.bfloat16)
    v = kv[:, d_pad:].astype(jnp.bfloat16)

    # Scores: q @ k^T without materializing a transpose (contract feature dims).
    s = lax.dot_general(q_sc[...], k, (((1,), (1,)), ((), ())),
                        preferred_element_type=jnp.float32)   # (tq, tk) f32

    # Mask key positions that are sequence padding.
    kv_pos = ki * tk + lax.broadcasted_iota(jnp.int32, s.shape, 1)
    s = jnp.where(kv_pos < seq_len, s, -jnp.inf)

    # Online softmax update (all f32).
    m_prev = m_sc[...]
    m_new = jnp.maximum(m_prev, jnp.max(s, axis=-1, keepdims=True))
    alpha = jnp.exp(m_prev - m_new)
    p = jnp.exp(s - m_new)
    l_sc[...] = alpha * l_sc[...] + jnp.sum(p, axis=-1, keepdims=True)
    acc_sc[...] = alpha * acc_sc[...] + jnp.dot(
        p.astype(jnp.bfloat16), v, preferred_element_type=jnp.float32)
    m_sc[...] = m_new

    @pl.when(ki == pl.num_programs(2) - 1)
    def _finalize():
        out = acc_sc[...] * pl.reciprocal(l_sc[...], approx=True)
        y = jnp.dot(out.astype(jnp.bfloat16), wo_ref[...],
                    preferred_element_type=jnp.float32) + bo_ref[...]
        o_ref[0] = y.astype(o_ref.dtype)


def attention_forward(x, params, *, seq_tile=256, compute_dtype=jnp.bfloat16):
    """x: (B, S, D); params: torch-style (out,in) weights wq,wk,wv,wo + biases."""
    B, S, D = x.shape
    d_pad = _round_up(D, 128)
    ts = min(seq_tile, _round_up(S, 8))      # seq tile for both Q and KV
    s_pad = _round_up(S, ts)

    def pad_w(w):   # (out,in) -> (d_pad, d_pad) in x @ W layout
        return jnp.pad(w.T, ((0, d_pad - D), (0, d_pad - D)))

    def pad_b(b):
        return jnp.pad(b, (0, d_pad - D)).reshape(1, d_pad).astype(jnp.float32)

    wq = pad_w(params["wq"]).astype(compute_dtype)
    wkv = jnp.concatenate([pad_w(params["wk"]), pad_w(params["wv"])],
                          axis=1).astype(compute_dtype)          # (D, 2D)
    wo = pad_w(params["wo"]).astype(compute_dtype)
    bq = pad_b(params["bq"])
    bkv = jnp.concatenate([pad_b(params["bk"]), pad_b(params["bv"])], axis=1)
    bo = pad_b(params["bo"])

    x_p = jnp.pad(x, ((0, 0), (0, s_pad - S), (0, d_pad - D))).astype(compute_dtype)

    n_tiles = s_pad // ts
    grid = (B, n_tiles, n_tiles)

    # Rough VMEM estimate -> explicit limit (respect v7x's 64 MiB physical).
    blk_x = ts * d_pad * 2
    weights = (2 * d_pad * d_pad + d_pad * 2 * d_pad) * 2
    biases = 4 * d_pad * 4
    out_blk = ts * d_pad * jnp.dtype(x.dtype).itemsize
    scratch = ts * d_pad * 2 + 2 * ts * 4 + ts * d_pad * 4
    vmem_est = 2 * (2 * blk_x + weights + biases + out_blk) + scratch
    vmem_limit = int(min(64 * 1024 * 1024, max(16 * 1024 * 1024, 2 * vmem_est)))

    kernel = functools.partial(
        attention_kernel,
        scale=float(D) ** -0.5, seq_len=S, tk=ts, d_pad=d_pad)

    w_spec = pl.BlockSpec((d_pad, d_pad), lambda b, qi, ki: (0, 0))
    b_spec = pl.BlockSpec((1, d_pad), lambda b, qi, ki: (0, 0))
    wkv_spec = pl.BlockSpec((d_pad, 2 * d_pad), lambda b, qi, ki: (0, 0))
    bkv_spec = pl.BlockSpec((1, 2 * d_pad), lambda b, qi, ki: (0, 0))

    out_p = pl.pallas_call(
        kernel,
        out_shape=jax.ShapeDtypeStruct((B, s_pad, d_pad), x.dtype),
        grid_spec=pltpu.PrefetchScalarGridSpec(
            num_scalar_prefetch=0,
            grid=grid,
            in_specs=[
                pl.BlockSpec((1, ts, d_pad), lambda b, qi, ki: (b, qi, 0)),  # x for Q
                pl.BlockSpec((1, ts, d_pad), lambda b, qi, ki: (b, ki, 0)),  # x for K/V
                w_spec, b_spec,        # q_proj
                wkv_spec, bkv_spec,    # fused k|v proj
                w_spec, b_spec,        # o_proj
            ],
            out_specs=pl.BlockSpec((1, ts, d_pad), lambda b, qi, ki: (b, qi, 0)),
            scratch_shapes=[
                pltpu.VMEM((ts, d_pad), compute_dtype),   # q tile (bf16)
                pltpu.VMEM((ts, 1), jnp.float32),         # running max
                pltpu.VMEM((ts, 1), jnp.float32),         # running sum
                pltpu.VMEM((ts, d_pad), jnp.float32),     # f32 accumulator
            ],
        ),
        compiler_params=pltpu.CompilerParams(
            dimension_semantics=("parallel", "parallel", "arbitrary"),
            vmem_limit_bytes=vmem_limit,
        ),
    )(x_p, x_p, wq, bq, wkv, bkv, wo, bo)

    return out_p[:, :S, :D]


def reference_forward(x, params):
    """Pure-JAX f32 reference matching the PyTorch forward (eval-mode dropout)."""
    D = x.shape[-1]
    q = x @ params["wq"].T + params["bq"]
    k = x @ params["wk"].T + params["bk"]
    v = x @ params["wv"].T + params["bv"]
    att = (q @ jnp.swapaxes(k, -2, -1)) * (D ** -0.5)
    att = jax.nn.softmax(att, axis=-1)
    out = att @ v
    return out @ params["wo"].T + params["bo"]


def init_params(key, dim):
    keys = jax.random.split(key, 8)
    scale = 1.0 / (dim ** 0.5)
    def w(k): return jax.random.uniform(k, (dim, dim), jnp.float32, -scale, scale)
    def b(k): return jax.random.uniform(k, (dim,), jnp.float32, -scale, scale)
    return {
        "wq": w(keys[0]), "bq": b(keys[1]),
        "wk": w(keys[2]), "bk": b(keys[3]),
        "wv": w(keys[4]), "bv": b(keys[5]),
        "wo": w(keys[6]), "bo": b(keys[7]),
    }


if __name__ == "__main__":
    key = jax.random.PRNGKey(0)
    k_x, k_p = jax.random.split(key)

    B, S, D = 2, 8, 32
    x = jax.random.normal(k_x, (B, S, D), jnp.float32)
    params = init_params(k_p, D)

    y = attention_forward(x, params)
    y = jax.block_until_ready(y)

    y_ref = reference_forward(x, params)
    assert y.shape == (B, S, D)
    # bf16 MXU operands with f32 accumulation -> bf16-appropriate tolerance.
    max_err = float(jnp.max(jnp.abs(y - y_ref)))
    assert jnp.allclose(y, y_ref, atol=2e-2, rtol=2e-2), (
        f"mismatch vs reference (max abs err {max_err})")

    print("KERNEL_OK")
</pallas_src>

<mosaic_0001>
module attributes {stable_mosaic.version = 11 : i64} {
  func.func @attention_kernel(%arg0: i32, %arg1: i32, %arg2: i32, %arg3: memref<1x8x128xbf16, #tpu.memory_space<vmem>>, %arg4: memref<1x8x128xbf16, #tpu.memory_space<vmem>>, %arg5: memref<128x128xbf16, #tpu.memory_space<vmem>>, %arg6: memref<1x128xf32, #tpu.memory_space<vmem>>, %arg7: memref<128x256xbf16, #tpu.memory_space<vmem>>, %arg8: memref<1x256xf32, #tpu.memory_space<vmem>>, %arg9: memref<128x128xbf16, #tpu.memory_space<vmem>>, %arg10: memref<1x128xf32, #tpu.memory_space<vmem>>, %arg11: memref<1x8x128xf32, #tpu.memory_space<vmem>>, %arg12: memref<8x128xbf16, #tpu.memory_space<vmem>>, %arg13: memref<8x1xf32, #tpu.memory_space<vmem>>, %arg14: memref<8x1xf32, #tpu.memory_space<vmem>>, %arg15: memref<8x128xf32, #tpu.memory_space<vmem>>) attributes {dimension_semantics = [#tpu.dimension_semantics<parallel>, #tpu.dimension_semantics<parallel>, #tpu.dimension_semantics<arbitrary>], iteration_bounds = array<i64: 2, 1, 1>, scalar_prefetch = 0 : i64, scratch_operands = 4 : i64, tpu.core_type = #tpu.core_type<tc>, window_params = [{transform_indices = @transform_0, window_bounds = array<i64: 1, 8, 128>}, {transform_indices = @transform_1, window_bounds = array<i64: 1, 8, 128>}, {pipeline_mode = #tpu.pipeline_mode<synchronous>, transform_indices = @transform_2, window_bounds = array<i64: 128, 128>}, {pipeline_mode = #tpu.pipeline_mode<synchronous>, transform_indices = @transform_3, window_bounds = array<i64: 1, 128>}, {pipeline_mode = #tpu.pipeline_mode<synchronous>, transform_indices = @transform_4, window_bounds = array<i64: 128, 256>}, {pipeline_mode = #tpu.pipeline_mode<synchronous>, transform_indices = @transform_5, window_bounds = array<i64: 1, 256>}, {pipeline_mode = #tpu.pipeline_mode<synchronous>, transform_indices = @transform_6, window_bounds = array<i64: 128, 128>}, {pipeline_mode = #tpu.pipeline_mode<synchronous>, transform_indices = @transform_7, window_bounds = array<i64: 1, 128>}, {transform_indices = @transform_8, window_bounds = array<i64: 1, 8, 128>}]} {
    %c0_i32 = arith.constant 0 : i32
    %0 = arith.cmpi eq, %arg2, %c0_i32 : i32
    %1 = arith.extui %0 : i1 to i32
    %c0_i32_0 = arith.constant 0 : i32
    %2 = arith.cmpi ne, %1, %c0_i32_0 : i32
    scf.if %2 {
      %c0_29 = arith.constant 0 : index
      %c0_30 = arith.constant 0 : index
      %c0_31 = arith.constant 0 : index
      %50 = vector.load %arg3[%c0_29, %c0_30, %c0_31] : memref<1x8x128xbf16, #tpu.memory_space<vmem>>, vector<1x8x128xbf16>
      %51 = vector.shape_cast %50 : vector<1x8x128xbf16> to vector<8x128xbf16>
      %c0_32 = arith.constant 0 : index
      %c0_33 = arith.constant 0 : index
      %52 = vector.load %arg5[%c0_32, %c0_33] : memref<128x128xbf16, #tpu.memory_space<vmem>>, vector<128x128xbf16>
      %cst_34 = arith.constant dense<0.000000e+00> : vector<8x128xf32>
      %53 = tpu.matmul %51, %52, %cst_34 {dimension_numbers = #tpu.dot_dimension_numbers<[1], [0], [0], [1], [0, 0, 1, 1], [], []>} : vector<8x128xbf16>, vector<128x128xbf16>, vector<8x128xf32> -> vector<8x128xf32>
      %c0_35 = arith.constant 0 : index
      %c0_36 = arith.constant 0 : index
      %54 = vector.load %arg6[%c0_35, %c0_36] : memref<1x128xf32, #tpu.memory_space<vmem>>, vector<1x128xf32>
      %55 = vector.broadcast %54 : vector<1x128xf32> to vector<8x128xf32>
      %56 = arith.addf %53, %55 : vector<8x128xf32>
      %cst_37 = arith.constant 0.176776692 : f32
      %57 = vector.broadcast %cst_37 : f32 to vector<8x128xf32>
      %58 = arith.mulf %56, %57 : vector<8x128xf32>
      %59 = arith.truncf %58 : vector<8x128xf32> to vector<8x128xbf16>
      %c0_38 = arith.constant 0 : index
      %c0_39 = arith.constant 0 : index
      %60 = vector.load %arg12[%c0_38, %c0_39] : memref<8x128xbf16, #tpu.memory_space<vmem>>, vector<8x128xbf16>
      tpu.vector_store %arg12[%c0_38, %c0_39], %59 {strides = array<i32>} : memref<8x128xbf16, #tpu.memory_space<vmem>>, vector<8x128xbf16>,
      %cst_40 = arith.constant 0xFF800000 : f32
      %61 = vector.broadcast %cst_40 : f32 to vector<8x1xf32>
      %c0_41 = arith.constant 0 : index
      %c0_42 = arith.constant 0 : index
      %62 = vector.load %arg13[%c0_41, %c0_42] : memref<8x1xf32, #tpu.memory_space<vmem>>, vector<8x1xf32>
      tpu.vector_store %arg13[%c0_41, %c0_42], %61 {strides = array<i32>} : memref<8x1xf32, #tpu.memory_space<vmem>>, vector<8x1xf32>,
      %cst_43 = arith.constant 0.000000e+00 : f32
      %63 = vector.broadcast %cst_43 : f32 to vector<8x1xf32>
      %c0_44 = arith.constant 0 : index
      %c0_45 = arith.constant 0 : index
      %64 = vector.load %arg14[%c0_44, %c0_45] : memref<8x1xf32, #tpu.memory_space<vmem>>, vector<8x1xf32>
      tpu.vector_store %arg14[%c0_44, %c0_45], %63 {strides = array<i32>} : memref<8x1xf32, #tpu.memory_space<vmem>>, vector<8x1xf32>,
      %cst_46 = arith.constant 0.000000e+00 : f32
      %65 = vector.broadcast %cst_46 : f32 to vector<8x128xf32>
      %c0_47 = arith.constant 0 : index
      %c0_48 = arith.constant 0 : index
      %66 = vector.load %arg15[%c0_47, %c0_48] : memref<8x128xf32, #tpu.memory_space<vmem>>, vector<8x128xf32>
      tpu.vector_store %arg15[%c0_47, %c0_48], %65 {strides = array<i32>} : memref<8x128xf32, #tpu.memory_space<vmem>>, vector<8x128xf32>,
    } else {
    }
    %c0 = arith.constant 0 : index
    %c0_1 = arith.constant 0 : index
    %c0_2 = arith.constant 0 : index
    %3 = vector.load %arg4[%c0, %c0_1, %c0_2] : memref<1x8x128xbf16, #tpu.memory_space<vmem>>, vector<1x8x128xbf16>
    %4 = vector.shape_cast %3 : vector<1x8x128xbf16> to vector<8x128xbf16>
    %c0_3 = arith.constant 0 : index
    %c0_4 = arith.constant 0 : index
    %5 = vector.load %arg7[%c0_3, %c0_4] : memref<128x256xbf16, #tpu.memory_space<vmem>>, vector<128x256xbf16>
    %cst = arith.constant dense<0.000000e+00> : vector<8x256xf32>
    %6 = tpu.matmul %4, %5, %cst {dimension_numbers = #tpu.dot_dimension_numbers<[1], [0], [0], [1], [0, 0, 1, 1], [], []>} : vector<8x128xbf16>, vector<128x256xbf16>, vector<8x256xf32> -> vector<8x256xf32>
    %c0_5 = arith.constant 0 : index
    %c0_6 = arith.constant 0 : index
    %7 = vector.load %arg8[%c0_5, %c0_6] : memref<1x256xf32, #tpu.memory_space<vmem>>, vector<1x256xf32>
    %8 = vector.broadcast %7 : vector<1x256xf32> to vector<8x256xf32>
    %9 = arith.addf %6, %8 : vector<8x256xf32>
    %10 = vector.extract_strided_slice %9 {offsets = [0, 0], sizes = [8, 128], strides = [1, 1]} : vector<8x256xf32> to vector<8x128xf32>
    %11 = arith.truncf %10 : vector<8x128xf32> to vector<8x128xbf16>
    %12 = vector.extract_strided_slice %9 {offsets = [0, 128], sizes = [8, 128], strides = [1, 1]} : vector<8x256xf32> to vector<8x128xf32>
    %13 = arith.truncf %12 : vector<8x128xf32> to vector<8x128xbf16>
    %c0_7 = arith.constant 0 : index
    %c0_8 = arith.constant 0 : index
    %14 = vector.load %arg12[%c0_7, %c0_8] : memref<8x128xbf16, #tpu.memory_space<vmem>>, vector<8x128xbf16>
    %cst_9 = arith.constant dense<0.000000e+00> : vector<8x8xf32>
    %15 = tpu.matmul %14, %11, %cst_9 {dimension_numbers = #tpu.dot_dimension_numbers<[1], [1], [0], [0], [0, 0, 1, 0], [], []>} : vector<8x128xbf16>, vector<8x128xbf16>, vector<8x8xf32> -> vector<8x8xf32>
    %c8_i32 = arith.constant 8 : i32
    %16 = arith.muli %arg2, %c8_i32 : i32
    %17 = tpu.iota {dimensions = array<i32: 1>} : vector<8x8xi32>
    %18 = vector.broadcast %16 : i32 to vector<8x8xi32>
    %19 = arith.addi %18, %17 : vector<8x8xi32>
    %c8_i32_10 = arith.constant 8 : i32
    %20 = vector.broadcast %c8_i32_10 : i32 to vector<8x8xi32>
    %21 = arith.cmpi slt, %19, %20 : vector<8x8xi32>
    %cst_11 = arith.constant 0xFF800000 : f32
    %22 = vector.broadcast %cst_11 : f32 to vector<8x8xf32>
    %23 = arith.select %21, %15, %22 : vector<8x8xi1>, vector<8x8xf32>
    %c0_12 = arith.constant 0 : index
    %c0_13 = arith.constant 0 : index
    %24 = vector.load %arg13[%c0_12, %c0_13] : memref<8x1xf32, #tpu.memory_space<vmem>>, vector<8x1xf32>
    %cst_14 = arith.constant dense<0xFF800000> : vector<8xf32>
    %25 = vector.multi_reduction <maximumf>, %23, %cst_14 [1] : vector<8x8xf32> to vector<8xf32>
    %26 = vector.shape_cast %25 : vector<8xf32> to vector<8x1xf32>
    %27 = arith.maximumf %24, %26 : vector<8x1xf32>
    %28 = arith.subf %24, %27 : vector<8x1xf32>
    %29 = math.exp %28 : vector<8x1xf32>
    %30 = vector.broadcast %27 : vector<8x1xf32> to vector<8x8xf32>
    %31 = arith.subf %23, %30 : vector<8x8xf32>
    %32 = math.exp %31 : vector<8x8xf32>
    %c0_15 = arith.constant 0 : index
    %c0_16 = arith.constant 0 : index
    %33 = vector.load %arg14[%c0_15, %c0_16] : memref<8x1xf32, #tpu.memory_space<vmem>>, vector<8x1xf32>
    %34 = arith.mulf %29, %33 : vector<8x1xf32>
    %cst_17 = arith.constant dense<0.000000e+00> : vector<8xf32>
    %35 = vector.multi_reduction <add>, %32, %cst_17 [1] : vector<8x8xf32> to vector<8xf32>
    %36 = vector.shape_cast %35 : vector<8xf32> to vector<8x1xf32>
    %37 = arith.addf %34, %36 : vector<8x1xf32>
    %c0_18 = arith.constant 0 : index
    %c0_19 = arith.constant 0 : index
    %38 = vector.load %arg14[%c0_18, %c0_19] : memref<8x1xf32, #tpu.memory_space<vmem>>, vector<8x1xf32>
    tpu.vector_store %arg14[%c0_18, %c0_19], %37 {strides = array<i32>} : memref<8x1xf32, #tpu.memory_space<vmem>>, vector<8x1xf32>,
    %c0_20 = arith.constant 0 : index
    %c0_21 = arith.constant 0 : index
    %39 = vector.load %arg15[%c0_20, %c0_21] : memref<8x128xf32, #tpu.memory_space<vmem>>, vector<8x128xf32>
    %40 = vector.broadcast %29 : vector<8x1xf32> to vector<8x128xf32>
    %41 = arith.mulf %40, %39 : vector<8x128xf32>
    %42 = arith.truncf %32 : vector<8x8xf32> to vector<8x8xbf16>
    %cst_22 = arith.constant dense<0.000000e+00> : vector<8x128xf32>
    %43 = tpu.matmul %42, %13, %cst_22 {dimension_numbers = #tpu.dot_dimension_numbers<[1], [0], [0], [1], [0, 0, 1, 1], [], []>} : vector<8x8xbf16>, vector<8x128xbf16>, vector<8x128xf32> -> vector<8x128xf32>
    %44 = arith.addf %41, %43 : vector<8x128xf32>
    %c0_23 = arith.constant 0 : index
    %c0_24 = arith.constant 0 : index
    %45 = vector.load %arg15[%c0_23, %c0_24] : memref<8x128xf32, #tpu.memory_space<vmem>>, vector<8x128xf32>
    tpu.vector_store %arg15[%c0_23, %c0_24], %44 {strides = array<i32>} : memref<8x128xf32, #tpu.memory_space<vmem>>, vector<8x128xf32>,
    %c0_25 = arith.constant 0 : index
    %c0_26 = arith.constant 0 : index
    %46 = vector.load %arg13[%c0_25, %c0_26] : memref<8x1xf32, #tpu.memory_space<vmem>>, vector<8x1xf32>
    tpu.vector_store %arg13[%c0_25, %c0_26], %27 {strides = array<i32>} : memref<8x1xf32, #tpu.memory_space<vmem>>, vector<8x1xf32>,
    %c0_i32_27 = arith.constant 0 : i32
    %47 = arith.cmpi eq, %arg2, %c0_i32_27 : i32
    %48 = arith.extui %47 : i1 to i32
    %c0_i32_28 = arith.constant 0 : i32
    %49 = arith.cmpi ne, %48, %c0_i32_28 : i32
    scf.if %49 {
      %c0_29 = arith.constant 0 : index
      %c0_30 = arith.constant 0 : index
      %50 = vector.load %arg15[%c0_29, %c0_30] : memref<8x128xf32, #tpu.memory_space<vmem>>, vector<8x128xf32>
      %c0_31 = arith.constant 0 : index
      %c0_32 = arith.constant 0 : index
      %51 = vector.load %arg14[%c0_31, %c0_32] : memref<8x1xf32, #tpu.memory_space<vmem>>, vector<8x1xf32>
      %52 = tpu.reciprocal %51 {approx = true} : vector<8x1xf32> -> vector<8x1xf32>
      %53 = vector.broadcast %52 : vector<8x1xf32> to vector<8x128xf32>
      %54 = arith.mulf %50, %53 : vector<8x128xf32>
      %55 = arith.truncf %54 : vector<8x128xf32> to vector<8x128xbf16>
      %c0_33 = arith.constant 0 : index
      %c0_34 = arith.constant 0 : index
      %56 = vector.load %arg9[%c0_33, %c0_34] : memref<128x128xbf16, #tpu.memory_space<vmem>>, vector<128x128xbf16>
      %cst_35 = arith.constant dense<0.000000e+00> : vector<8x128xf32>
      %57 = tpu.matmul %55, %56, %cst_35 {dimension_numbers = #tpu.dot_dimension_numbers<[1], [0], [0], [1], [0, 0, 1, 1], [], []>} : vector<8x128xbf16>, vector<128x128xbf16>, vector<8x128xf32> -> vector<8x128xf32>
      %c0_36 = arith.constant 0 : index
      %c0_37 = arith.constant 0 : index
      %58 = vector.load %arg10[%c0_36, %c0_37] : memref<1x128xf32, #tpu.memory_space<vmem>>, vector<1x128xf32>
      %59 = vector.broadcast %58 : vector<1x128xf32> to vector<8x128xf32>
      %60 = arith.addf %57, %59 : vector<8x128xf32>
      %c0_38 = arith.constant 0 : index
      %c0_39 = arith.constant 0 : index
      %c0_40 = arith.constant 0 : index
      %61 = vector.load %arg11[%c0_38, %c0_39, %c0_40] : memref<1x8x128xf32, #tpu.memory_space<vmem>>, vector<1x8x128xf32>
      %62 = vector.shape_cast %61 : vector<1x8x128xf32> to vector<8x128xf32>
      %63 = vector.shape_cast %60 : vector<8x128xf32> to vector<1x8x128xf32>
      tpu.vector_store %arg11[%c0_38, %c0_39, %c0_40], %63 {strides = array<i32>} : memref<1x8x128xf32, #tpu.memory_space<vmem>>, vector<1x8x128xf32>,
    } else {
    }
    return
  }
  func.func @transform_0(%arg0: i32, %arg1: i32, %arg2: i32) -> (i32, i32, i32) {
    %c0_i32 = arith.constant 0 : i32
    %c0_i32_0 = arith.constant 0 : i32
    return %arg0, %arg1, %c0_i32 : i32, i32, i32
  }
  func.func @transform_1(%arg0: i32, %arg1: i32, %arg2: i32) -> (i32, i32, i32) {
    %c0_i32 = arith.constant 0 : i32
    %c0_i32_0 = arith.constant 0 : i32
    return %arg0, %arg2, %c0_i32 : i32, i32, i32
  }
  func.func @transform_2(%arg0: i32, %arg1: i32, %arg2: i32) -> (i32, i32) {
    %c0_i32 = arith.constant 0 : i32
    %c0_i32_0 = arith.constant 0 : i32
    %c0_i32_1 = arith.constant 0 : i32
    return %c0_i32, %c0_i32_0 : i32, i32
  }
  func.func @transform_3(%arg0: i32, %arg1: i32, %arg2: i32) -> (i32, i32) {
    %c0_i32 = arith.constant 0 : i32
    %c0_i32_0 = arith.constant 0 : i32
    %c0_i32_1 = arith.constant 0 : i32
    return %c0_i32, %c0_i32_0 : i32, i32
  }
  func.func @transform_4(%arg0: i32, %arg1: i32, %arg2: i32) -> (i32, i32) {
    %c0_i32 = arith.constant 0 : i32
    %c0_i32_0 = arith.constant 0 : i32
    %c0_i32_1 = arith.constant 0 : i32
    return %c0_i32, %c0_i32_0 : i32, i32
  }
  func.func @transform_5(%arg0: i32, %arg1: i32, %arg2: i32) -> (i32, i32) {
    %c0_i32 = arith.constant 0 : i32
    %c0_i32_0 = arith.constant 0 : i32
    %c0_i32_1 = arith.constant 0 : i32
    return %c0_i32, %c0_i32_0 : i32, i32
  }
  func.func @transform_6(%arg0: i32, %arg1: i32, %arg2: i32) -> (i32, i32) {
    %c0_i32 = arith.constant 0 : i32
    %c0_i32_0 = arith.constant 0 : i32
    %c0_i32_1 = arith.constant 0 : i32
    return %c0_i32, %c0_i32_0 : i32, i32
  }
  func.func @transform_7(%arg0: i32, %arg1: i32, %arg2: i32) -> (i32, i32) {
    %c0_i32 = arith.constant 0 : i32
    %c0_i32_0 = arith.constant 0 : i32
    %c0_i32_1 = arith.constant 0 : i32
    return %c0_i32, %c0_i32_0 : i32, i32
  }
  func.func @transform_8(%arg0: i32, %arg1: i32, %arg2: i32) -> (i32, i32, i32) {
    %c0_i32 = arith.constant 0 : i32
    %c0_i32_0 = arith.constant 0 : i32
    return %arg0, %arg1, %c0_i32 : i32, i32, i32
  }
}

</mosaic_0001>

<bundles_post_ra>
// kernel: tpu_custom_call.1
= control target key start
LH: loop header
LB: loop body
LE: loop exit
PB: predicated region body
PF: predicated region fallthrough
CT: control target
= control target key end

     0   :  { %s2058_s0 = inlined_call_operand.hbm [shape: bf16[2,8,128], index: 0, kind: input, shape index: {}]   ;;  %s2059_s1 = inlined_call_operand.hbm [shape: bf16[2,8,128], index: 1, kind: input, shape index: {}]   ;;  %s2060_s2 = inlined_call_operand.hbm [shape: bf16[128,128], index: 2, kind: input, shape index: {}]   ;;  %s2061_s3 = inlined_call_operand.vmem [shape: f32[1,128], index: 3, kind: input, shape index: {}]   ;;  %s2062_s4 = inlined_call_operand.hbm [shape: bf16[128,256], index: 4, kind: input, shape index: {}]   ;;  %s2063_s5 = inlined_call_operand.vmem [shape: f32[1,256], index: 5, kind: input, shape index: {}]   ;;  %s2064_s6 = inlined_call_operand.hbm [shape: bf16[128,128], index: 6, kind: input, shape index: {}]   ;;  %s2065_s7 = inlined_call_operand.vmem [shape: f32[1,128], index: 7, kind: input, shape index: {}]   ;;  %s2066_s8 = inlined_call_operand.hbm [shape: f32[2,8,128], index: 8, kind: output, shape index: {}]  }
   0x1   :  { %2077 = sst [smem:[#allocation24_spill]] %s2060_s2 }
   0x2   :  { %2078 = sst [smem:[#allocation25_spill]] %s2062_s4 }
   0x3   :  { %2079 = sst [smem:[#allocation26_spill]] %s2064_s6 }
   0x4   :  { %2080 = sst [smem:[#allocation27_spill]] %s2066_s8 }
   0x5   :  { %13 = vsyncpa [#allocation7], 0 }
   0x6   :  { %15 = vsyncpa [#allocation7 + $0x1], 0 }
   0x7   :  { %16 = vsyncpa [#allocation10], 0 }
   0x8   :  { %18 = vsyncpa [#allocation10 + $0x1], 0 }
   0x9   :  { %19 = vsyncpa [#allocation13], 0 }
   0xa   :  { %20 = vsyncpa [#allocation8], 0 }
   0xb   :  { %22 = vsyncpa [#allocation8 + $0x1], 0  ;;  %s1694_s27 = smov 0   ;;  %s1696_s28 = smov 0  }
   0xc   :  { %s1698_s29 = smov 0   ;;  %s1700_s30 = smov 0  }
   0xd   :  { %s1702_s9 = smov 0   ;;  %s1704_s10 = smov 0  }
   0xe LB: > { %2081 = sst [smem:[#allocation21_spill]] %s1613_s27  ;;  %s1725_s11 = sadd.s32 4294967295, %s1633_s10   ;;  %s1633_s10 = sphi %s1704_s10, %s28_s10   ;;  %s1629_s9 = sphi %s1702_s9, %s2115_s9   ;;  %s1625_s30 = sphi %s1700_s30, %s2114_s30   ;;  %s1621_s29 = sphi %s1698_s29, %s2113_s29   ;;  %s1617_s28 = sphi %s1696_s28, %s2112_s28   ;;  %s1613_s27 = sphi %s1694_s27, %s2111_s27  }
   0xf   : > { %s1111_s12 = sadd.s32 4294967294, %s1633_s10   ;;  %p69_p0 = scmp.ne.s32.totalorder %s1617_s28, %s1613_s27 }
  0x10   : > { %p2067_p1 = scmp.eq.s32.totalorder %s1725_s11, 0  ;;  %p255_p3 = scmp.eq.s32.totalorder %s1111_s12, 1 }
  0x11   : > { %p1112_p5 = scmp.ge.s32.totalorder %s1633_s10, 1  ;;  %p262_p7 = scmp.lt.s32.totalorder %s1633_s10, 3 }
  0x12   : > { %p1734_p4 = por %p2067_p1, %p69_p0  ;;  %p1739_p6 = por %p255_p3, %p69_p0 }
  0x13   : > { %p1744_p8 = pnand %p1112_p5, %p262_p7  ;;  %s1635_s16 = smov [#allocation11]  }
  0x14   : > { %s2082_s13 = scalar_select %p1734_p4, 1, 0 }
  0x15   : > { %s2083_s14 = scalar_select %p1739_p6, 1, 0 }
  0x16   : > { %s2085_s15 = scalar_select %p1744_p8, 1, 0 }
  0x17   : > { %2084 = sst [smem:[#allocation22_spill]] %s2083_s14  ;;  %s274_s17 = sshll.u32 %s1635_s16, 4  ;;  %s1748_s17 = int_to_ptr.vmem [resolvable:$true] %s274_s17 }
  0x18   : > { %p1259_p9 = pneg %p1744_p8  ;;  %s1636_s19 = smov [#allocation12]  }
  0x19   : > { %s290_s20 = sshll.u32 %s1636_s19, 4  ;;  %s2087_s2 = sld [smem:[#allocation24_spill]]  ;;  %s1759_s20 = int_to_ptr.vmem [resolvable:$true] %s290_s20 }
  0x1a   : > { %p1755_p11 = pnand %p1259_p9, %p2067_p1 }
  0x1c   : > { %p1769_p13 = pneg %p1755_p11 }
  0x1f   : > { %s1395_s23 = scalar_lea.hbm %s2087_s2, 1024 }
  0x20   : > { %p1396_p12 = scmp.ne.s32.totalorder %s2087_s2, %s1395_s23  ;;  %p1402_p5 = scmp.lt.u32.totalorder %s1395_s23, %s2087_s2 }
  0x22   : > { %p1398_p0 = pnand %p1769_p13, %p1396_p12 }
  0x24   : > { %p1399_p3 = pneg %p1398_p0 }
  0x26   : > { %p1404_p7 = pnand %p1402_p5, %p1399_p3 }
  0x28   : > { %1407 = shalt.err (!%p1404_p7)
}
  0x29   : > { %s1408_s19 = scalar_lea.vmem %s1748_s17, 1024  ;;  %p1416_p2 = scmp.lt.s32.totalorder %s1748_s17, %s1748_s17 }
  0x2a   : > { %p1409_p9 = scmp.ne.s32.totalorder %s1748_s17, %s1408_s19  ;;  %p1417_p6 = scmp.lt.s32.totalorder %s1408_s19, %s1408_s19 }
  0x2c   : > { %p1411_p10 = pnand %p1409_p9, %p1769_p13  ;;  %p1418_p12 = por %p1417_p6, %p1416_p2 }
  0x2e   : > { %p1412_p1 = pneg %p1411_p10 }
  0x30   : > { %p1419_p0 = pnand %p1418_p12, %p1412_p1 }
  0x32   : > { %1422 = shalt.err (!%p1419_p0)
}
  0x33   : > { %s2071_s21 = smov 64   ;;  %s2072_s22 = smov 4  }
  0x34   : > { %1262 = dma.hbm_to_vmem [thread:$0]  (!%p1755_p11), %s2087_s2, 1024, %s1748_s17, [#allocation10], %s2071_s21, %s2071_s21, %s2072_s22  }
  0x35   : > { %s2089_s4 = sld [smem:[#allocation25_spill]] }
  0x3b   : > { %s1423_s16 = scalar_lea.hbm %s2089_s4, 2048 }
  0x3c   : > { %p1424_p1 = scmp.ne.s32.totalorder %s2089_s4, %s1423_s16  ;;  %p1430_p10 = scmp.lt.u32.totalorder %s1423_s16, %s2089_s4 }
  0x3e   : > { %p1426_p2 = pnand %p1424_p1, %p1769_p13 }
  0x40   : > { %p1427_p6 = pneg %p1426_p2 }
  0x42   : > { %p1432_p3 = pnand %p1430_p10, %p1427_p6 }
  0x44   : > { %1435 = shalt.err (!%p1432_p3)
}
  0x45   : > { %s1436_s17 = scalar_lea.vmem %s1759_s20, 2048  ;;  %p1444_p12 = scmp.lt.s32.totalorder %s1759_s20, %s1759_s20 }
  0x46   : > { %p1437_p5 = scmp.ne.s32.totalorder %s1759_s20, %s1436_s17  ;;  %p1445_p0 = scmp.lt.s32.totalorder %s1436_s17, %s1436_s17 }
  0x48   : > { %p1439_p7 = pnand %p1437_p5, %p1769_p13  ;;  %p1446_p1 = por %p1445_p0, %p1444_p12 }
  0x4a   : > { %p1440_p9 = pneg %p1439_p7 }
  0x4c   : > { %p1447_p2 = pnand %p1446_p1, %p1440_p9 }
  0x4e   : > { %1450 = shalt.err (!%p1447_p2)
}
  0x4f   : > { %s1639_s14 = smov 128   ;;  %s1640_s8 = smov 8  }
  0x50   : > { %1265 = dma.hbm_to_vmem [thread:$0]  (!%p1755_p11), %s2089_s4, 2048, %s1759_s20, [#allocation13], %s1639_s14, %s1639_s14, %s1640_s8  }
  0x51   : > { %s1641_s24 = smov [#allocation14]   ;;  %s2090_s6 = sld [smem:[#allocation26_spill]] }
  0x52   : > { %s306_s25 = sshll.u32 %s1641_s24, 4  ;;  %s307_s25 = int_to_ptr.vmem [resolvable:$true] %s306_s25 }
  0x57   : > { %s1451_s19 = scalar_lea.hbm %s2090_s6, 1024 }
  0x58   : > { %p1452_p6 = scmp.ne.s32.totalorder %s2090_s6, %s1451_s19  ;;  %p1458_p5 = scmp.lt.u32.totalorder %s1451_s19, %s2090_s6 }
  0x5a   : > { %p1454_p10 = pnand %p1452_p6, %p1769_p13 }
  0x5c   : > { %p1455_p3 = pneg %p1454_p10 }
  0x5e   : > { %p1460_p7 = pnand %p1458_p5, %p1455_p3 }
  0x60   : > { %1463 = shalt.err (!%p1460_p7)
}
  0x61   : > { %s1464_s20 = scalar_lea.vmem %s307_s25, 1024  ;;  %p1472_p1 = scmp.lt.s32.totalorder %s307_s25, %s307_s25 }
  0x62   : > { %p1465_p9 = scmp.ne.s32.totalorder %s307_s25, %s1464_s20  ;;  %p1473_p2 = scmp.lt.s32.totalorder %s1464_s20, %s1464_s20 }
  0x64   : > { %p1467_p12 = pnand %p1465_p9, %p1769_p13  ;;  %p1474_p4 = por %p1473_p2, %p1472_p1 }
  0x66   : > { %p1468_p0 = pneg %p1467_p12 }
  0x68   : > { %p1475_p8 = pnand %p1474_p4, %p1468_p0 }
  0x6a   : > { %1478 = shalt.err (!%p1475_p8)
}
  0x6b   : > { %s2091_s21 = smov 4   ;;  %s2092_s14 = smov 64  }
  0x6c   : > { %1268 = dma.hbm_to_vmem [thread:$0]  (!%p1755_p11), %s2090_s6, 1024, %s307_s25, [#allocation13], %s2092_s14, %s2092_s14, %s2091_s21  }
  0x6d   : > { %s47_s26 = sadd.s32 1, %s1629_s9  ;;  %s56_s18 = sadd.s32 1, %s1621_s29 }
  0x6e   : > { %p49_p4 = scmp.ge.s32.totalorder %s47_s26, 2  ;;  %p63_p8 = scmp.ne.s32.totalorder %s1621_s29, %s1617_s28 }
  0x6f   : > { %p64_p13 = scmp.eq.s32.totalorder %s1633_s10, 0  ;;  %p2095_p10 = scmp.eq.s32.totalorder %s1725_s11, 1 }
  0x70   : > { %s2117_s26 = smov (%p49_p4, %s47_s26), 0  ;;  %p1283_p11 = scmp.lt.s32.totalorder %s1633_s10, 2 }
  0x71   : > { %2093 = sst [smem:[#allocation23_spill]] %s2117_s26  ;;  %p1844_p6 = por %p64_p13, %p63_p8 }
  0x72   : > { %p1850_p3 = por %p2095_p10, %p63_p8  ;;  %s51_s23 = ssub.s32 %s1629_s9, %s2117_s26 }
  0x73   : > { %p54_p5 = scmp.eq.s32.totalorder %s51_s23, 0  ;;  %s323_s24 = sand.u32 1, %s1621_s29  }
  0x74   : > { %s2096_s27 = scalar_select %p1850_p3, 1, 0 }
  0x75   : > { %s1858_s25 = sshll.u32 %s323_s24, 2  ;;  %s1118_s16 = sshll.u32 %s1629_s9, 6 }
  0x76   : > { %s1861_s12 = scalar_select %p54_p5, %s1621_s29, %s56_s18  }
  0x77   : > { %s1867_s20 = scalar_lea.hbm %s2058_s0, %s1118_s16  ;;  %s327_s21 = scalar_lea.vmem [#allocation6], %s1858_s25 }
  0x78   : > { %s335_s14 = sshll.u32 %s327_s21, 4  ;;  %p1874_p7 = pnand %p1283_p11, %p1844_p6  ;;  %s1870_s14 = int_to_ptr.vmem [resolvable:$true] %s335_s14 }
  0x79   : > { %s1881_s23 = scalar_lea.hbm %s2059_s1, %s1118_s16  ;;  %s342_s19 = sand.u32 1, %s1633_s10  }
  0x7a   : > { %s324_s17 = scalar_lea.sflag [#allocation7], %s323_s24  ;;  %s1479_s4 = scalar_lea.hbm %s1867_s20, 64 }
  0x7b   : > { %p1480_p9 = scmp.ne.s32.totalorder %s1867_s20, %s1479_s4  ;;  %p1481_p12 = pneg %p1874_p7 }
  0x7c   : > { %s1484_s6 = scalar_lea.hbm %s2058_s0, 128  ;;  %p1485_p2 = scmp.lt.u32.totalorder %s1867_s20, %s2058_s0 }
  0x7d   : > { %p1482_p0 = pnand %p1481_p12, %p1480_p9  ;;  %p1486_p4 = scmp.lt.u32.totalorder %s1484_s6, %s1479_s4 }
  0x7e   : > { %p1488_p13 = scmp.lt.u32.totalorder %s1479_s4, %s1867_s20 }
  0x7f   : > { %p1483_p1 = pneg %p1482_p0  ;;  %p1487_p8 = por %p1486_p4, %p1485_p2 }
  0x81   : > { %p1489_p6 = por %p1488_p13, %p1487_p8 }
  0x83   : > { %p1490_p10 = pnand %p1489_p6, %p1483_p1 }
  0x85   : > { %1493 = shalt.err (!%p1490_p10)
}
  0x86   : > { %s1494_s24 = scalar_lea.vmem %s1870_s14, 64  ;;  %s1642_s16 = smov [#allocation6]  }
  0x87   : > { %p1495_p11 = scmp.ne.s32.totalorder %s1870_s14, %s1494_s24  ;;  %s1499_s18 = sshll.u32 %s1642_s16, 4  ;;  %s1500_s18 = int_to_ptr.vmem [resolvable:$false] %s1499_s18 }
  0x88   : > { %s1501_s26 = scalar_lea.vmem %s1500_s18, 128  ;;  %p1502_p0 = scmp.lt.s32.totalorder %s1870_s14, %s1500_s18 }
  0x89   : > { %p1497_p5 = pnand %p1495_p11, %p1481_p12  ;;  %p1503_p2 = scmp.lt.s32.totalorder %s1501_s26, %s1494_s24 }
  0x8b   : > { %p1498_p9 = pneg %p1497_p5  ;;  %p1504_p4 = por %p1503_p2, %p1502_p0 }
  0x8d   : > { %p1505_p8 = pnand %p1504_p4, %p1498_p9 }
  0x8f   : > { %1508 = shalt.err (!%p1505_p8)
}
  0x90   : > { %1272 = dma.hbm_to_vmem [thread:$0]  (!%p1874_p7), %s1867_s20, 64, %s1870_s14, %s324_s17  }
  0x91   : > { %s346_s4 = scalar_lea.vmem [#allocation9], %s1858_s25  ;;  %s343_s8 = scalar_lea.sflag [#allocation10], %s342_s19 }
  0x92   : > { %s354_s6 = sshll.u32 %s346_s4, 4  ;;  %s1509_s21 = scalar_lea.hbm %s1881_s23, 64  ;;  %s355_s6 = int_to_ptr.vmem [resolvable:$true] %s354_s6 }
  0x93   : > { %p1510_p1 = scmp.ne.s32.totalorder %s1881_s23, %s1509_s21  ;;  %s1514_s16 = scalar_lea.hbm %s2059_s1, 128 }
  0x94   : > { %p1515_p10 = scmp.lt.u32.totalorder %s1881_s23, %s2059_s1  ;;  %p1516_p11 = scmp.lt.u32.totalorder %s1514_s16, %s1509_s21 }
  0x95   : > { %p1512_p13 = pnand %p1510_p1, %p1481_p12  ;;  %p1518_p9 = scmp.lt.u32.totalorder %s1509_s21, %s1881_s23 }
  0x96   : > { %p1517_p5 = por %p1516_p11, %p1515_p10 }
  0x97   : > { %p1513_p6 = pneg %p1512_p13 }
  0x98   : > { %p1519_p0 = por %p1518_p9, %p1517_p5 }
  0x9a   : > { %p1520_p2 = pnand %p1519_p0, %p1513_p6 }
  0x9c   : > { %1523 = shalt.err (!%p1520_p2)
}
  0x9d   : > { %s1524_s25 = scalar_lea.vmem %s355_s6, 64  ;;  %s1643_s20 = smov [#allocation9]  }
  0x9e   : > { %p1525_p4 = scmp.ne.s32.totalorder %s355_s6, %s1524_s25  ;;  %s1529_s14 = sshll.u32 %s1643_s20, 4  ;;  %s1530_s14 = int_to_ptr.vmem [resolvable:$false] %s1529_s14 }
  0x9f   : > { %s1531_s19 = scalar_lea.vmem %s1530_s14, 128  ;;  %p1532_p13 = scmp.lt.s32.totalorder %s355_s6, %s1530_s14 }
  0xa0   : > { %p1527_p8 = pnand %p1525_p4, %p1481_p12  ;;  %p1533_p3 = scmp.lt.s32.totalorder %s1531_s19, %s1524_s25 }
  0xa2   : > { %p1528_p1 = pneg %p1527_p8  ;;  %p1534_p10 = por %p1533_p3, %p1532_p13 }
  0xa4   : > { %p1535_p11 = pnand %p1534_p10, %p1528_p1 }
  0xa6   : > { %1538 = shalt.err (!%p1535_p11)
}
  0xa7   : > { %1275 = dma.hbm_to_vmem [thread:$0]  (!%p1874_p7), %s1881_s23, 64, %s355_s6, %s343_s8  }
  0xa8   : > { %p2098_p6 = scmp.ne.s32.totalorder %s2085_s15, 0 }
  0xa9   : > { %s1934_s17 = sand.u32 (!%p2098_p6), 1, %s1617_s28   ;;  %p2099_p3 = scmp.ne.s32.totalorder (!%p2098_p6), %s2082_s13, 0 }
  0xaa   : > { %363 = sbr.rel (%p2098_p6) target bundleno = 1472 (0x5c0), region = 52  ;;  %s1122_s4 = sshll.u32 (!%p2098_p6), %s1934_s17, 2 }
  0xab   : > { %s366_s21 = scalar_lea.sflag (!%p2098_p6), [#allocation7], %s1934_s17  ;;  %s1938_s22 = scalar_lea.vmem (!%p2098_p6), [#allocation6], %s1122_s4 }
  0xb1   : > { %1592 = dma.done.wait (%p2099_p3), %s366_s21, 64  }
  0xb2   : > { %1594 = vsyncadd (%p2099_p3), %s366_s21, 4294967232  ;;  %s374_s2 = sand.u32 1, %s1725_s11   ;;  %s1945_s23 = scalar_lea.vmem [#allocation9], %s1122_s4 }
  0xb3   : > { %s375_s15 = scalar_lea.sflag [#allocation10], %s374_s2 }
  0xb4   : > { %1596 = dma.done.wait (%p2099_p3), %s375_s15, 64  }
  0xb5   : > { %1598 = vsyncadd (%p2099_p3), %s375_s15, 4294967232  ;;  %p2100_p7 = scmp.eq.s32.totalorder %s1725_s11, 0 }
  0xb7   : > { %1600 = dma.done.wait (%p2100_p7), [#allocation10], 1024   ;;  %p2101_p12 = pmov %p2100_p7 }
  0xb8   : > { %p2102_p5 = pmov %p2100_p7 }
  0xb9   : > { %1602 = vsyncadd (%p2101_p12), [#allocation10], 4294966272 }
  0xba   : > { %1604 = dma.done.wait (%p2102_p5), [#allocation13], 3072   ;;  %p2103_p9 = pmov %p2102_p5 }
  0xbb   : > { %v1644_v0 = vmov 0.0   ;;  %vm1645_vm0 = vmmov 0   ;;  %v1646_v1 = vmov 0   ;;  %v1349_v2 = vld [vmem:[#allocation11] sm:$0xff]   ;;  %v1353_v5 = vld [vmem:[#allocation11 + $0x8] sm:$0xff]   ;;  %v1357_v8 = vld [vmem:[#allocation11 + $0x10] sm:$0xff]   ;;  %v571_v28 = vlaneseq }
  0xbc   : > { %1606 = vsyncadd (%p2103_p9), [#allocation13], 4294964224  ;;  %1189 = vmatprep.subr.bf16.mxu0 %v1644_v0  ;;  %1205 = vmatprep.mubr.msk.bf16.mxu0 %vm1645_vm0, %v1644_v0  ;;  %v1350_v3 = vld [vmem:[#allocation12 + $0x4] ss:$8 sps:$4 sm:$0xff]   ;;  %v1352_v4 = vld [vmem:[#allocation12] ss:$8 sps:$4 sm:$0xff]  }
  0xbd   : > { %693 = vmatprep.mubr.bf16.mxu1 %v1646_v1  ;;  %1347 = vset.pattern.permute.xlu0 %v1646_v1  ;;  %v1354_v6 = vld [vmem:[#allocation12 + $0x14] ss:$8 sps:$4 sm:$0xff]   ;;  %v1356_v7 = vld [vmem:[#allocation12 + $0x10] ss:$8 sps:$4 sm:$0xff]   ;;  %v1358_v9 = vld [vmem:[#allocation12 + $0x24] ss:$8 sps:$4 sm:$0xff]  }
  0xbe   : > { %1348 = vset.pattern.permute.xlu1 %v1646_v1  ;;  %1190 = vmatpush3.bf16.msra.mxu0 %v1349_v2  ;;  %v1360_v10 = vld [vmem:[#allocation12 + $0x20] ss:$8 sps:$4 sm:$0xff]   ;;  %v1362_v11 = vld [vmem:[#allocation12 + $0x34] ss:$8 sps:$4 sm:$0xff]   ;;  %v1364_v13 = vld [vmem:[#allocation12 + $0x30] ss:$8 sps:$4 sm:$0xff]  }
  0xbf   : > { %661 = vmatprep.subr.bf16.mxu1 %v1350_v3  ;;  %1191 = vmatprep.subr.bf16.mxu0 %v1644_v0  ;;  %v1361_v12 = vld [vmem:[#allocation11 + $0x18] sm:$0xff]   ;;  %v1366_v14 = vld [vmem:[#allocation12 + $0x44] ss:$8 sps:$4 sm:$0xff]   ;;  %v1368_v16 = vld [vmem:[#allocation12 + $0x40] ss:$8 sps:$4 sm:$0xff]   ;;  %v572_v29 = vshrl.u32 %v571_v28, 7 }
  0xc0   : > { %662 = vmatpush1.bf16.msra.mxu1 %v1352_v4  ;;  %v1365_v15 = vld [vmem:[#allocation11 + $0x20] sm:$0xff]   ;;  %v1370_v17 = vld [vmem:[#allocation12 + $0x54] ss:$8 sps:$4 sm:$0xff]   ;;  %v1369_v18 = vld [vmem:[#allocation11 + $0x28] sm:$0xff]   ;;  %vm788_vm1 = vcmask 1043456   ;;  %vm548_vm2 = vcmask 7168  }
  0xc1   : > { %663 = vmatprep.subr.bf16.mxu1 %v1354_v6  ;;  %v1372_v19 = vld [vmem:[#allocation12 + $0x50] ss:$8 sps:$4 sm:$0xff]   ;;  %v1374_v20 = vld [vmem:[#allocation12 + $0x64] ss:$8 sps:$4 sm:$0xff]   ;;  %v1376_v22 = vld [vmem:[#allocation12 + $0x60] ss:$8 sps:$4 sm:$0xff]  }
  0xc2   : > { %1192 = vmatpush3.bf16.msra.mxu0 %v1353_v5  ;;  %v1373_v21 = vld [vmem:[#allocation11 + $0x30] sm:$0xff]   ;;  %v1377_v24 = vld [vmem:[#allocation11 + $0x38] sm:$0xff]   ;;  %v573_v30 = vsub.s32 0, %v572_v29  ;;  %v577_v34 = vsub.s32 1, %v572_v29  ;;  %v1647_v53 = vmov -inf   ;;  %550 = vst.msk [vmem:[#allocation4] sm:$0xff] %vm548_vm2, %v1644_v0 }
  0xc3   : > { %1193 = vmatprep.subr.bf16.mxu0 %v1644_v0  ;;  %v1378_v23 = vld [vmem:[#allocation12 + $0x74] ss:$8 sps:$4 sm:$0xff]   ;;  %v1380_v25 = vld [vmem:[#allocation12 + $0x70] ss:$8 sps:$4 sm:$0xff]   ;;  %549 = vst.msk [vmem:[#allocation3] sm:$0xff] %vm548_vm2, %v1647_v53  ;;  %v747_v54 = vand.u32 127, %v571_v28 }
  0xc4   : > { %664 = vmatpush1.bf16.msra.mxu1 %v1356_v7  ;;  %v433_v26 = vld [vmem:[%s1938_s22] sm:$0xf]  ;;  %v552_v27 = vld [vmem:[%s1945_s23] sm:$0xf]  ;;  %vm753_vm4 = vcmask 64512   ;;  %s1127_s24 = sshll.u32 %s1934_s17, 3 }
  0xc5   : > { %665 = vmatprep.subr.bf16.mxu1 %v1358_v9  ;;  %v569_v31 = vld [vmem:[%s2063_s5] sm:$0x3]  ;;  %vm750_vm3 = vcmp.lt.s32.totalorder %v747_v54, 8  ;;  %s1164_s26 = sshll.u32 %s1625_s30, 7  ;;  %s427_s25 = scalar_lea.vmem [#allocation15], %s1127_s24 }
  0xc6   : > { %1194 = vmatpush3.bf16.msra.mxu0 %v1357_v8  ;;  %v1128_v32 = vld [vmem:[%s2061_s3] ss:$0 sm:$0xff]  ;;  %v574_v33 = vrot.slane %v569_v31, %v573_v30  ;;  %v578_v42 = vrot.slane %v569_v31, %v577_v34  ;;  %s975_s20 = sshll.u32 %s427_s25, 4  ;;  %s2104_s4 = sld [smem:[#allocation27_spill]]  ;;  %s2011_s20 = int_to_ptr.vmem [resolvable:$true] %s975_s20 }
  0xc7   : > { %1195 = vmatprep.subr.bf16.mxu0 %v1644_v0  ;;  %s961_s22 = scalar_lea.sflag [#allocation8], %s1934_s17  ;;  %s1539_s30 = scalar_lea.vmem %s2011_s20, 128 }
  0xc8   : > { %666 = vmatpush1.bf16.msra.mxu1 %v1360_v10  ;;  %v1381_v10 = vld [vmem:[#allocation14] sm:$0xff]   ;;  %p1540_p0 = scmp.ne.s32.totalorder %s2011_s20, %s1539_s30  ;;  %p2105_p2 = scmp.ne.s32.totalorder %s2096_s27, 0 }
  0xc9   : > { %667 = vmatprep.subr.bf16.mxu1 %v1362_v11  ;;  %v1382_v11 = vld [vmem:[#allocation14 + $0x8] sm:$0xff]   ;;  %s1648_s2 = smov [#allocation15]  }
  0xca   : > { %1196 = vmatpush3.bf16.msra.mxu0 %v1361_v12  ;;  %v752_v61 = vld [vmem:[#allocation3] sm:$0xff]  ;;  %v1383_v12 = vld [vmem:[#allocation14 + $0x10] sm:$0xff]   ;;  %p1541_p4 = pnand %p1540_p0, %p2105_p2  ;;  %s1543_s15 = sshll.u32 %s1648_s2, 4  ;;  %s1544_s15 = int_to_ptr.vmem [resolvable:$false] %s1543_s15 }
  0xcb   : > { %1197 = vmatprep.subr.bf16.mxu0 %v1644_v0  ;;  %s1545_s23 = scalar_lea.vmem %s1544_s15, 256  ;;  %p1546_p1 = scmp.lt.s32.totalorder %s2011_s20, %s1544_s15 }
  0xcc   : > { %668 = vmatpush1.bf16.msra.mxu1 %v1364_v13  ;;  %v1384_v13 = vld [vmem:[#allocation14 + $0x18] sm:$0xff]   ;;  %s2009_s21 = scalar_lea.hbm %s2104_s4, %s1164_s26  ;;  %p1542_p8 = pneg %p1541_p4 }
  0xcd   : > { %669 = vmatprep.subr.bf16.mxu1 %v1366_v14  ;;  %v1385_v14 = vld [vmem:[#allocation14 + $0x20] sm:$0xff]   ;;  %p1547_p13 = scmp.lt.s32.totalorder %s1545_s23, %s1539_s30 }
  0xce   : > { %1198 = vmatpush3.bf16.msra.mxu0 %v1365_v15  ;;  %v1386_v15 = vld [vmem:[#allocation14 + $0x28] sm:$0xff]  }
  0xcf   : > { %1199 = vmatprep.subr.bf16.mxu0 %v1644_v0  ;;  %p1548_p10 = por %p1547_p13, %p1546_p1 }
  0xd0   : > { %670 = vmatpush1.bf16.msra.mxu1 %v1368_v16  ;;  %v1387_v16 = vld [vmem:[#allocation14 + $0x30] sm:$0xff]  }
  0xd1   : > { %671 = vmatprep.subr.bf16.mxu1 %v1370_v17  ;;  %v769_v17 = vld [vmem:[#allocation4] sm:$0xff]  ;;  %p1549_p11 = pnand %p1548_p10, %p1542_p8 }
  0xd2   : > { %1200 = vmatpush3.bf16.msra.mxu0 %v1369_v18 }
  0xd3   : > { %1201 = vmatprep.subr.bf16.mxu0 %v1644_v0 }
  0xd4   : > { %672 = vmatpush1.bf16.msra.mxu1 %v1372_v19 }
  0xd5   : > { %673 = vmatprep.subr.bf16.mxu1 %v1374_v20 }
  0xd6   : > { %1202 = vmatpush3.bf16.msra.mxu0 %v1373_v21 }
  0xd7   : > { %1203 = vmatprep.subr.bf16.mxu0 %v1644_v0 }
  0xd8   : > { %674 = vmatpush1.bf16.msra.mxu1 %v1376_v22 }
  0xd9   : > { %675 = vmatprep.subr.bf16.mxu1 %v1378_v23  ;;  %v1388_v23 = vld [vmem:[#allocation14 + $0x38] sm:$0xff]  }
  0xda   : > { %1204 = vmatpush3.bf16.msra.mxu0 %v1377_v24 }
  0xdb   : > { %1221 = vmatprep.subr.bf16.mxu0 %v1644_v0 }
  0xdc   : > { %676 = vmatpush1.bf16.msra.mxu1 %v1380_v25 }
  0xdd   : > { %1206 = vmatmul.mubr.bf16.vlgmr.msra.gmra.mrb[0].mxu0 %v433_v26  ;;  %1209 = vmatprep.subr.bf16.mxu1 %v1644_v0 }
  0xde   : > { %1237 = vmatprep.mubr.msk.bf16.mxu0 %vm1645_vm0, %v1644_v0  ;;  %1222 = vmatpush3.bf16.msra.mxu0 %v1381_v10 }
  0xdf   : > { %694 = vmatmul.mubr.bf16.vlgmr.msra.gmra.mrb[0].mxu1 %v552_v27  ;;  %1223 = vmatprep.subr.bf16.mxu0 %v1644_v0 }
  0xe0   : > { %1211 = vmatprep.mubr.msk.bf16.mxu1 %vm1645_vm0, %v1644_v0 }
  0xe2   : > { %1224 = vmatpush3.bf16.msra.mxu0 %v1382_v11 }
  0xe3   : > { %1225 = vmatprep.subr.bf16.mxu0 %v1644_v0 }
  0xe6   : > { %1226 = vmatpush3.bf16.msra.mxu0 %v1383_v12 }
  0xe7   : > { %1227 = vmatprep.subr.bf16.mxu0 %v1644_v0 }
  0xea   : > { %1228 = vmatpush3.bf16.msra.mxu0 %v1384_v13 }
  0xeb   : > { %1229 = vmatprep.subr.bf16.mxu0 %v1644_v0 }
  0xee   : > { %1230 = vmatpush3.bf16.msra.mxu0 %v1385_v14 }
  0xef   : > { %1231 = vmatprep.subr.bf16.mxu0 %v1644_v0 }
  0xf2   : > { %1232 = vmatpush3.bf16.msra.mxu0 %v1386_v15 }
  0xf3   : > { %1233 = vmatprep.subr.bf16.mxu0 %v1644_v0 }
  0xf6   : > { %1234 = vmatpush3.bf16.msra.mxu0 %v1387_v16 }
  0xf7   : > { %1235 = vmatprep.subr.bf16.mxu0 %v1644_v0 }
  0xfa   : > { %1236 = vmatpush3.bf16.msra.mxu0 %v1388_v23 }
 0x1b0   : > { %v539_v35 = vpop.f32.mrb[0].mxu0 }
 0x1b1   : > { %v540_v36 = vadd.f32 %v1128_v32, %v539_v35  ;;  %v1207_v37 = vpop.f32.mrb[1].mxu0 }
 0x1b2   : > { %v695_v38 = vpop.f32.mrb[0].mxu1  ;;  %v542_v39 = vpop.f32.mrb[2].mxu0 }
 0x1b3   : > { %v545_v40 = vmul.f32 0.17677669, %v540_v36  ;;  %v696_v41 = vadd.f32 %v695_v38, %v574_v33  ;;  %v697_v43 = vpop.f32.mrb[1].mxu1  ;;  %v1208_v44 = vpop.f32.mrb[3].mxu0  ;;  %v1154_v33 = vld [vmem:[%s2065_s7] ss:$0 sm:$0xff] }
 0x1b4   : > { %v699_v45 = vpop.f32.mrb[2].mxu1  ;;  %v698_v49 = vadd.f32 %v697_v43, %v578_v42 }
 0x1b5   : > { %v546_v46 = vpack.c.bf16 %v545_v40, %v545_v40  ;;  %v702_v47 = vpack.c.bf16 %v696_v41, %v696_v41  ;;  %v700_v48 = vpop.f32.mrb[3].mxu1 }
 0x1b6   : > { %v703_v50 = vpack.c.bf16 %v698_v49, %v698_v49 }
 0x1b7   : > { %547 = vst [vmem:[#allocation2] sm:$0xf] %v546_v46  ;;  %1210 = vmatpush3.bf16.xpose.msra.mxu1 %v702_v47 }
 0x1b8   : > { %1215 = vmatprep.subr.bf16.mxu1 %v1644_v0  ;;  %v790_v52 = vsel %vm788_vm1, %v703_v50, 0 }
 0x1be   : > { %v704_v51 = vld [vmem:[#allocation2] sm:$0xf] }
 0x1bf   : > { %1212 = vmatmul.mubr.bf16.vlgmr.msra.gmra.mrb[4].mxu1 %v704_v51 }
 0x1c0   : > { %1216 = vmatpush3.bf16.msra.mxu1 %v790_v52  ;;  %1217 = vmatprep.mubr.msk.bf16.mxu1 %vm1645_vm0, %v1644_v0 }
 0x292   : > { %v739_v55 = vpop.f32.mrb[4].mxu1 }
 0x293   : > { %v751_v56 = vsel %vm750_vm3, %v739_v55, -inf  ;;  %v1213_v57 = vpop.f32.mrb[5].mxu1 }
 0x294   : > { %v742_v58 = vpop.f32.mrb[6].mxu1  ;;  %v754_v59 = vsel %vm753_vm4, %v751_v56, -inf }
 0x295   : > { %755 = vmax.xlane.f32.xlu0 %v754_v59  ;;  %v1214_v60 = vpop.f32.mrb[7].mxu1 }
 0x322   : > { %v756_v62 = vpop.xlane.xlu0 %755 }
 0x323   : > { %v757_v63 = vmax.f32 %v752_v61, %v756_v62 }
 0x325   : > { %v758_v1 = vsub.f32 %v752_v61, %v757_v63  ;;  %834 = vst.msk [vmem:[#allocation3] sm:$0xff] %vm548_vm2, %v757_v63  ;;  %763 = vperm.xlu0 %1347, %v757_v63  }
 0x327   : > { %v759_v8 = vmul.f32 1.442695, %v758_v1 }
 0x3a4   : > { %v764_v2 = vpop.permute.xlu0 %763 }
 0x3a5   : > { %v766_v3 = vsub.f32 %v751_v56, %v764_v2 }
 0x3a7   : > { %v767_v4 = vmul.f32 1.442695, %v766_v3 }
 0x3a9   : > { %1389 = vpow2.f32 %v767_v4 }
 0x3aa   : > { %1391 = vpow2.f32 %v759_v8 }
 0x3b3   : > { %v1390_v5 = vpop.eup %1389 }
 0x3b4   : > { %v771_v6 = vsel %vm753_vm4, %v1390_v5, 0.0  ;;  %v784_v7 = vpack.c.bf16 %v1390_v5, %v1390_v5  ;;  %v1392_v9 = vpop.eup %1391 }
 0x3b5   : > { %772 = vadd.xlane.f32.xlu1 %v771_v6  ;;  %v770_v18 = vmul.f32 %v1392_v9, %v769_v17 }
 0x3b6   : > { %1218 = vmatmul.mubr.msk.bf16.vlgmr.msra.gmra.mrb[8].mxu1 %vm753_vm4, %v784_v7 }
 0x3c6   : > { %780 = vperm.xlu1 %1348, %v1392_v9  }
 0x442   : > { %v773_v19 = vpop.xlane.xlu1 %772 }
 0x443   : > { %v774_v20 = vadd.f32 %v773_v19, %v770_v18 }
 0x445   : > { %776 = vst.msk [vmem:[#allocation4] sm:$0xff] %vm548_vm2, %v774_v20 }
 0x446   : > { %v781_v28 = vpop.permute.xlu1 %780 }
 0x447   : > { %v783_v0 = vmul.f32 0.0, %v781_v28 }
 0x44c   : > { %v839_v21 = vld [vmem:[#allocation4] sm:$0xff] }
 0x44d   : > { %1393 = vrcp.f32 %v839_v21 }
 0x457   : > { %v1394_v22 = vpop.eup %1393 }
 0x458   : > { %843 = vperm.xlu1 %1348, %v1394_v22  }
 0x489   : > { %v826_v24 = vpop.f32.mrb[8].mxu1 }
 0x48a   : > { %v1219_v25 = vpop.f32.mrb[9].mxu1  ;;  %v832_v29 = vadd.f32 %v826_v24, %v783_v0 }
 0x48b   : > { %v829_v26 = vpop.f32.mrb[10].mxu1 }
 0x48c   : > { %v1220_v27 = vpop.f32.mrb[11].mxu1 }
 0x4d7   : > { %v844_v30 = vpop.permute.xlu1 %843 }
 0x4d8   : > { %v846_v31 = vmul.f32 %v844_v30, %v832_v29 }
 0x4da   : > { %v847_v32 = vpack.c.bf16 %v846_v31, %v846_v31 }
 0x4dc   : > { %1238 = vmatmul.mubr.bf16.vlgmr.msra.gmra.mrb[4].mxu0 %v847_v32 }
 0x5af   : > { %v953_v34 = vpop.f32.mrb[4].mxu0 }
 0x5b0   : > { %v954_v35 = vadd.f32 %v1154_v33, %v953_v34  ;;  %v1239_v36 = vpop.f32.mrb[5].mxu0 }
 0x5b1   : > { %v956_v37 = vpop.f32.mrb[6].mxu0 }
 0x5b2   : > { %959 = vst [vmem:[%s427_s25] sm:$0xff] %v954_v35  ;;  %v1240_v38 = vpop.f32.mrb[7].mxu0 }
 0x5b3   : > { %1552 = shalt.err (!%p1549_p11)
}
 0x5b4   : > { %s1553_s17 = scalar_lea.hbm %s2009_s21, 128  ;;  %s1557_s6 = scalar_lea.hbm %s2104_s4, 256 }
 0x5b5   : > { %p1554_p6 = scmp.ne.s32.totalorder %s2009_s21, %s1553_s17  ;;  %p1558_p12 = scmp.lt.u32.totalorder %s2009_s21, %s2104_s4 }
 0x5b6   : > { %p1559_p5 = scmp.lt.u32.totalorder %s1557_s6, %s1553_s17  ;;  %p1561_p0 = scmp.lt.u32.totalorder %s1553_s17, %s2009_s21 }
 0x5b7   : > { %p1555_p3 = pnand %p1554_p6, %p2105_p2 }
 0x5b8   : > { %p1560_p9 = por %p1559_p5, %p1558_p12 }
 0x5b9   : > { %p1556_p7 = pneg %p1555_p3 }
 0x5ba   : > { %p1562_p4 = por %p1561_p0, %p1560_p9 }
 0x5bc   : > { %p1563_p8 = pnand %p1562_p4, %p1556_p7 }
 0x5be   : > { %1566 = shalt.err (!%p1563_p8)
}
 0x5bf   : > { %1257 = dma.vmem_to_hbm [thread:$0]  (%p2105_p2), %s2011_s20, 128, %s2009_s21, %s961_s22  }
 0x5c0 PF: > { %s2106_s16 = sld [smem:[#allocation21_spill]]  ;;  %s2107_s18 = sld [smem:[#allocation22_spill]] }
 0x5c1   : > { %p2109_p13 = scmp.ge.s32.totalorder %s1633_s10, 2 }
 0x5c6   : > { %s987_s26 = sand.u32 1, %s2106_s16   ;;  %p2108_p1 = scmp.ne.s32.totalorder %s2107_s18, 0 }
 0x5c7   : > { %s988_s25 = scalar_lea.sflag [#allocation8], %s987_s26 }
 0x5c8   : > { %p1277_p10 = pnand %p2109_p13, %p2108_p1 }
 0x5ca   : > { %1608 = dma.done.wait (!%p1277_p10), %s988_s25, 128  }
 0x5cb   : > { %1610 = vsyncadd (!%p1277_p10), %s988_s25, 4294967168  ;;  %s28_s10 = sadd.s32 1, %s1633_s10   ;;  %s2110_s14 = sld [smem:[#allocation23_spill]] }
 0x5cc   : > { %p25_p11 = scmp.ge.s32.totalorder %s28_s10, 4   ;;  %s2111_s27 = smov %s1617_s28 }
 0x5cd   : > { %s2112_s28 = smov %s1621_s29  ;;  %s2113_s29 = smov %s1861_s12 }
 0x5ce   : > { %s2114_s30 = smov %s1629_s9  ;;  %27 = sbr.rel (!%p25_p11) target bundleno = 14 (0xe), region = 130 }
 0x5d1   : > { %s2115_s9 = smov %s2110_s14 }
 0x5d5   :  { %993 = vsyncpa [#allocation7], 1 }
 0x5d6   :  { %995 = vsyncpa [#allocation7 + $0x1], 1 }
 0x5d7   :  { %996 = vsyncpa [#allocation10], 1 }
 0x5d8   :  { %998 = vsyncpa [#allocation10 + $0x1], 1 }
 0x5d9   :  { %999 = vsyncpa [#allocation13], 1 }
 0x5da   :  { %1000 = vsyncpa [#allocation8], 1 }
 0x5db   :  { %1002 = vsyncpa [#allocation8 + $0x1], 1 }

</bundles_post_ra>
